<compile_context>
chip_gen: v6e
topology: v6e:2x2x1
jax: 0.10.0
libtpu: 0.0.40
codegen_flags: <defaults>
</compile_context>

<pallas_src>
import math

import numpy as np
import jax
import jax.numpy as jnp
from jax.experimental import pallas as pl
from jax.experimental.pallas import tpu as pltpu


LANE = 128      # TPU lane width (last dim)
SUBLANE = 8     # TPU sublane width (second-to-last dim)


def _round_up(v, m):
    return ((v + m - 1) // m) * m


# --------------------------------------------------------------------------- #
# Kernel: one grid step == one graph / one forward call of the batch.
# All operands are already padded to lane-dense shapes by the wrapper.
# --------------------------------------------------------------------------- #
def gcn_batched_kernel(x_ref, adj_ref, w1_ref, b1_ref, w2_ref, b2_ref, out_ref):
    x = x_ref[0]                # [Np, Fp]  f32
    adj_hat = adj_ref[...]      # [Np, Np]  f32  (pre-symmetrized + I, constant over grid)

    # --- GraphConvolution 1: relu(adj_hat @ (x @ W1) + b1)
    support1 = jnp.dot(x, w1_ref[...], preferred_element_type=jnp.float32)
    h1 = jnp.dot(adj_hat, support1, preferred_element_type=jnp.float32) + b1_ref[...]
    h1 = jnp.maximum(h1, 0.0)

    # TODO(synk): F.dropout with training=True would need pltpu.prng_seed /
    # prng_random_bits masking; implemented as eval-mode identity.

    # --- GraphConvolution 2: adj_hat @ (h1 @ W2) + b2
    support2 = jnp.dot(h1, w2_ref[...], preferred_element_type=jnp.float32)
    out = jnp.dot(adj_hat, support2, preferred_element_type=jnp.float32) + b2_ref[...]

    # --- log_softmax along dim=1 (rows), numerically stable.
    # Padded output columns carry a -1e30 bias -> exp() == 0, so the result on
    # the real columns is identical to the unpadded computation.
    m = jnp.max(out, axis=1, keepdims=True)
    z = out - m
    lse = jnp.log(jnp.sum(jnp.exp(z), axis=1, keepdims=True))
    out_ref[0] = z - lse


# --------------------------------------------------------------------------- #
# Wrapper: padding, static-adj preprocessing, batched pallas_call.
# --------------------------------------------------------------------------- #
def onlstm_graph_forward(x, adj, w1, b1, w2, b2):
    """x: [B, N, F] batch of forward calls sharing the (static) adjacency."""
    B, N, F = x.shape
    H = w1.shape[1]
    O = w2.shape[1]

    Np = _round_up(N, SUBLANE)
    Fp = _round_up(F, LANE)
    Hp = _round_up(H, LANE)
    Op = _round_up(O, LANE)

    # Static-adj preprocessing (hoisted out of the kernel; adj is a fixed module
    # buffer in ONLSTMGraph, so doing this once per wrapper call is identical to
    # the per-forward torch ops): adj_hat = max(adj, adj.T) + I.
    adj_hat = jnp.maximum(adj, adj.T) + jnp.eye(N, dtype=adj.dtype)

    # Lane-dense zero padding (padded rows/cols contribute exactly zero to the
    # real outputs; padded output classes get -1e30 bias for exact log_softmax).
    xp = jnp.zeros((B, Np, Fp), jnp.float32).at[:, :N, :F].set(x)
    adjp = jnp.zeros((Np, Np), jnp.float32).at[:N, :N].set(adj_hat)
    w1p = jnp.zeros((Fp, Hp), jnp.float32).at[:F, :H].set(w1)
    b1p = jnp.zeros((1, Hp), jnp.float32).at[:, :H].set(b1.reshape(1, H))
    w2p = jnp.zeros((Hp, Op), jnp.float32).at[:H, :O].set(w2)
    b2p = jnp.full((1, Op), -1e30, jnp.float32).at[:, :O].set(b2.reshape(1, O))

    outp = pl.pallas_call(
        gcn_batched_kernel,
        out_shape=jax.ShapeDtypeStruct((B, Np, Op), jnp.float32),
        grid=(B,),
        in_specs=[
            pl.BlockSpec((1, Np, Fp), lambda b: (b, 0, 0)),   # x: per-graph block
            pl.BlockSpec((Np, Np), lambda b: (0, 0)),         # adj_hat: constant
            pl.BlockSpec((Fp, Hp), lambda b: (0, 0)),         # W1: constant
            pl.BlockSpec((1, Hp), lambda b: (0, 0)),          # b1: constant
            pl.BlockSpec((Hp, Op), lambda b: (0, 0)),         # W2: constant
            pl.BlockSpec((1, Op), lambda b: (0, 0)),          # b2: constant
        ],
        out_specs=pl.BlockSpec((1, Np, Op), lambda b: (b, 0, 0)),
        compiler_params=pltpu.CompilerParams(
            dimension_semantics=("parallel",)),
    )(xp, adjp, w1p, b1p, w2p, b2p)

    return outp[:, :N, :O]


# --------------------------------------------------------------------------- #
# Host-side construction mirroring ONLSTMGraph.__init__ and the param init of
# GraphConvolution.reset_parameters.
# --------------------------------------------------------------------------- #
def build_onlstm_adj(distence):
    d = np.asarray(distence, dtype=np.float32)
    n = d.shape[0]
    adj = np.zeros((n, n), np.float32)
    for i in range(n):
        for j in range(i):
            mv = float(np.max(d[j:i]))
            dis = mv - d[i] + mv - d[j]
            adj[i, j] = dis
            adj[j, i] = dis
    return jnp.asarray(adj)


def init_gcn_params(key, nfeature, nhidden, noutput):
    """uniform(-stdv, stdv), stdv = 1/sqrt(out_features) -- matches PyTorch."""
    k1, k2, k3, k4 = jax.random.split(key, 4)
    stdv1 = 1.0 / math.sqrt(nhidden)
    stdv2 = 1.0 / math.sqrt(noutput)
    w1 = jax.random.uniform(k1, (nfeature, nhidden), jnp.float32, -stdv1, stdv1)
    b1 = jax.random.uniform(k2, (nhidden,), jnp.float32, -stdv1, stdv1)
    w2 = jax.random.uniform(k3, (nhidden, noutput), jnp.float32, -stdv2, stdv2)
    b2 = jax.random.uniform(k4, (noutput,), jnp.float32, -stdv2, stdv2)
    return w1, b1, w2, b2


def reference_forward(x, adj, w1, b1, w2, b2):
    """Pure-JAX reference with the exact torch semantics (single graph)."""
    adjt = adj.T
    c = (adjt > adj).astype(adj.dtype)
    adj_hat = adj + adjt * c - adj * c + jnp.eye(adj.shape[0], dtype=adj.dtype)
    h1 = jnp.maximum(adj_hat @ (x @ w1) + b1, 0.0)
    out = adj_hat @ (h1 @ w2) + b2
    return jax.nn.log_softmax(out, axis=1)


if __name__ == "__main__":
    # Small ONLSTMGraph: 16 nodes (len(distence)=16), 16 input features,
    # 32 hidden, 8 output classes, batch of 8 forward calls.
    B, N, NFEATURE, NHIDDEN, NOUTPUT = 8, 16, 16, 32, 8

    key = jax.random.PRNGKey(0)
    kd, kx, kparams = jax.random.split(key, 3)

    distence = jax.random.uniform(kd, (N,), jnp.float32)
    adj = build_onlstm_adj(np.asarray(jax.device_get(distence)))

    x = jax.random.normal(kx, (B, N, NFEATURE), jnp.float32)
    w1, b1, w2, b2 = init_gcn_params(kparams, NFEATURE, NHIDDEN, NOUTPUT)

    out = onlstm_graph_forward(x, adj, w1, b1, w2, b2)
    jax.block_until_ready(out)

    # Correctness: rows are valid log-probabilities and match the pure-JAX ref.
    assert out.shape == (B, N, NOUTPUT)
    row_sums = jnp.sum(jnp.exp(out), axis=-1)
    assert bool(jnp.all(jnp.abs(row_sums - 1.0) < 1e-4))

    ref = jax.vmap(lambda xb: reference_forward(xb, adj, w1, b1, w2, b2))(x)
    assert bool(jnp.all(jnp.abs(out - ref) < 1e-4))

    print("KERNEL_OK")
</pallas_src>

<mosaic_0001>
module attributes {stable_mosaic.version = 11 : i64} {
  func.func @gcn_batched_kernel(%arg0: i32, %arg1: memref<1x16x128xf32, #tpu.memory_space<vmem>>, %arg2: memref<16x16xf32, #tpu.memory_space<vmem>>, %arg3: memref<128x128xf32, #tpu.memory_space<vmem>>, %arg4: memref<1x128xf32, #tpu.memory_space<vmem>>, %arg5: memref<128x128xf32, #tpu.memory_space<vmem>>, %arg6: memref<1x128xf32, #tpu.memory_space<vmem>>, %arg7: memref<1x16x128xf32, #tpu.memory_space<vmem>>) attributes {dimension_semantics = [#tpu.dimension_semantics<parallel>], iteration_bounds = array<i64: 8>, scalar_prefetch = 0 : i64, scratch_operands = 0 : i64, tpu.core_type = #tpu.core_type<tc>, window_params = [{transform_indices = @transform_0, window_bounds = array<i64: 1, 16, 128>}, {pipeline_mode = #tpu.pipeline_mode<synchronous>, transform_indices = @transform_1, window_bounds = array<i64: 16, 16>}, {pipeline_mode = #tpu.pipeline_mode<synchronous>, transform_indices = @transform_2, window_bounds = array<i64: 128, 128>}, {pipeline_mode = #tpu.pipeline_mode<synchronous>, transform_indices = @transform_3, window_bounds = array<i64: 1, 128>}, {pipeline_mode = #tpu.pipeline_mode<synchronous>, transform_indices = @transform_4, window_bounds = array<i64: 128, 128>}, {pipeline_mode = #tpu.pipeline_mode<synchronous>, transform_indices = @transform_5, window_bounds = array<i64: 1, 128>}, {transform_indices = @transform_6, window_bounds = array<i64: 1, 16, 128>}]} {
    %c0 = arith.constant 0 : index
    %c0_0 = arith.constant 0 : index
    %c0_1 = arith.constant 0 : index
    %0 = vector.load %arg1[%c0, %c0_0, %c0_1] : memref<1x16x128xf32, #tpu.memory_space<vmem>>, vector<1x16x128xf32>
    %1 = vector.shape_cast %0 : vector<1x16x128xf32> to vector<16x128xf32>
    %c0_2 = arith.constant 0 : index
    %c0_3 = arith.constant 0 : index
    %2 = vector.load %arg2[%c0_2, %c0_3] : memref<16x16xf32, #tpu.memory_space<vmem>>, vector<16x16xf32>
    %c0_4 = arith.constant 0 : index
    %c0_5 = arith.constant 0 : index
    %3 = vector.load %arg3[%c0_4, %c0_5] : memref<128x128xf32, #tpu.memory_space<vmem>>, vector<128x128xf32>
    %cst = arith.constant dense<0.000000e+00> : vector<16x128xf32>
    %4 = tpu.matmul %1, %3, %cst {dimension_numbers = #tpu.dot_dimension_numbers<[1], [0], [0], [1], [0, 0, 1, 1], [], []>} : vector<16x128xf32>, vector<128x128xf32>, vector<16x128xf32> -> vector<16x128xf32>
    %cst_6 = arith.constant dense<0.000000e+00> : vector<16x128xf32>
    %5 = tpu.matmul %2, %4, %cst_6 {dimension_numbers = #tpu.dot_dimension_numbers<[1], [0], [0], [1], [0, 0, 1, 1], [], []>} : vector<16x16xf32>, vector<16x128xf32>, vector<16x128xf32> -> vector<16x128xf32>
    %c0_7 = arith.constant 0 : index
    %c0_8 = arith.constant 0 : index
    %6 = vector.load %arg4[%c0_7, %c0_8] : memref<1x128xf32, #tpu.memory_space<vmem>>, vector<1x128xf32>
    %7 = vector.broadcast %6 : vector<1x128xf32> to vector<16x128xf32>
    %8 = arith.addf %5, %7 : vector<16x128xf32>
    %cst_9 = arith.constant 0.000000e+00 : f32
    %9 = vector.broadcast %cst_9 : f32 to vector<16x128xf32>
    %10 = arith.maximumf %8, %9 : vector<16x128xf32>
    %c0_10 = arith.constant 0 : index
    %c0_11 = arith.constant 0 : index
    %11 = vector.load %arg5[%c0_10, %c0_11] : memref<128x128xf32, #tpu.memory_space<vmem>>, vector<128x128xf32>
    %cst_12 = arith.constant dense<0.000000e+00> : vector<16x128xf32>
    %12 = tpu.matmul %10, %11, %cst_12 {dimension_numbers = #tpu.dot_dimension_numbers<[1], [0], [0], [1], [0, 0, 1, 1], [], []>} : vector<16x128xf32>, vector<128x128xf32>, vector<16x128xf32> -> vector<16x128xf32>
    %cst_13 = arith.constant dense<0.000000e+00> : vector<16x128xf32>
    %13 = tpu.matmul %2, %12, %cst_13 {dimension_numbers = #tpu.dot_dimension_numbers<[1], [0], [0], [1], [0, 0, 1, 1], [], []>} : vector<16x16xf32>, vector<16x128xf32>, vector<16x128xf32> -> vector<16x128xf32>
    %c0_14 = arith.constant 0 : index
    %c0_15 = arith.constant 0 : index
    %14 = vector.load %arg6[%c0_14, %c0_15] : memref<1x128xf32, #tpu.memory_space<vmem>>, vector<1x128xf32>
    %15 = vector.broadcast %14 : vector<1x128xf32> to vector<16x128xf32>
    %16 = arith.addf %13, %15 : vector<16x128xf32>
    %cst_16 = arith.constant dense<0xFF800000> : vector<16xf32>
    %17 = vector.multi_reduction <maximumf>, %16, %cst_16 [1] : vector<16x128xf32> to vector<16xf32>
    %18 = vector.shape_cast %17 : vector<16xf32> to vector<16x1xf32>
    %19 = vector.broadcast %18 : vector<16x1xf32> to vector<16x128xf32>
    %20 = arith.subf %16, %19 : vector<16x128xf32>
    %21 = math.exp %20 : vector<16x128xf32>
    %cst_17 = arith.constant dense<0.000000e+00> : vector<16xf32>
    %22 = vector.multi_reduction <add>, %21, %cst_17 [1] : vector<16x128xf32> to vector<16xf32>
    %23 = vector.shape_cast %22 : vector<16xf32> to vector<16x1xf32>
    %24 = math.log %23 : vector<16x1xf32>
    %25 = vector.broadcast %24 : vector<16x1xf32> to vector<16x128xf32>
    %26 = arith.subf %20, %25 : vector<16x128xf32>
    %c0_18 = arith.constant 0 : index
    %c0_19 = arith.constant 0 : index
    %c0_20 = arith.constant 0 : index
    %27 = vector.load %arg7[%c0_18, %c0_19, %c0_20] : memref<1x16x128xf32, #tpu.memory_space<vmem>>, vector<1x16x128xf32>
    %28 = vector.shape_cast %27 : vector<1x16x128xf32> to vector<16x128xf32>
    %29 = vector.shape_cast %26 : vector<16x128xf32> to vector<1x16x128xf32>
    tpu.vector_store %arg7[%c0_18, %c0_19, %c0_20], %29 {strides = array<i32>} : memref<1x16x128xf32, #tpu.memory_space<vmem>>, vector<1x16x128xf32>,
    return
  }
  func.func @transform_0(%arg0: i32) -> (i32, i32, i32) {
    %c0_i32 = arith.constant 0 : i32
    %c0_i32_0 = arith.constant 0 : i32
    %c0_i32_1 = arith.constant 0 : i32
    return %arg0, %c0_i32, %c0_i32_0 : i32, i32, i32
  }
  func.func @transform_1(%arg0: i32) -> (i32, i32) {
    %c0_i32 = arith.constant 0 : i32
    %c0_i32_0 = arith.constant 0 : i32
    %c0_i32_1 = arith.constant 0 : i32
    return %c0_i32, %c0_i32_0 : i32, i32
  }
  func.func @transform_2(%arg0: i32) -> (i32, i32) {
    %c0_i32 = arith.constant 0 : i32
    %c0_i32_0 = arith.constant 0 : i32
    %c0_i32_1 = arith.constant 0 : i32
    return %c0_i32, %c0_i32_0 : i32, i32
  }
  func.func @transform_3(%arg0: i32) -> (i32, i32) {
    %c0_i32 = arith.constant 0 : i32
    %c0_i32_0 = arith.constant 0 : i32
    %c0_i32_1 = arith.constant 0 : i32
    return %c0_i32, %c0_i32_0 : i32, i32
  }
  func.func @transform_4(%arg0: i32) -> (i32, i32) {
    %c0_i32 = arith.constant 0 : i32
    %c0_i32_0 = arith.constant 0 : i32
    %c0_i32_1 = arith.constant 0 : i32
    return %c0_i32, %c0_i32_0 : i32, i32
  }
  func.func @transform_5(%arg0: i32) -> (i32, i32) {
    %c0_i32 = arith.constant 0 : i32
    %c0_i32_0 = arith.constant 0 : i32
    %c0_i32_1 = arith.constant 0 : i32
    return %c0_i32, %c0_i32_0 : i32, i32
  }
  func.func @transform_6(%arg0: i32) -> (i32, i32, i32) {
    %c0_i32 = arith.constant 0 : i32
    %c0_i32_0 = arith.constant 0 : i32
    %c0_i32_1 = arith.constant 0 : i32
    return %arg0, %c0_i32, %c0_i32_0 : i32, i32, i32
  }
}

</mosaic_0001>

<bundles_post_ra>
// kernel: tpu_custom_call.1
= control target key start
LH: loop header
LB: loop body
LE: loop exit
PB: predicated region body
PF: predicated region fallthrough
CT: control target
= control target key end

     0   :  { %11 = vsyncpa [#allocation3], 0  ;;  %s1512_s0 = inlined_call_operand.hbm [shape: f32[8,16,128], index: 0, kind: input, shape index: {}]   ;;  %s1513_s1 = inlined_call_operand.hbm [shape: f32[16,16], index: 1, kind: input, shape index: {}]   ;;  %s1514_s2 = inlined_call_operand.hbm [shape: f32[128,128], index: 2, kind: input, shape index: {}]   ;;  %s1515_s3 = inlined_call_operand.vmem [shape: f32[1,128], index: 3, kind: input, shape index: {}]   ;;  %s1516_s4 = inlined_call_operand.hbm [shape: f32[128,128], index: 4, kind: input, shape index: {}]   ;;  %s1517_s5 = inlined_call_operand.vmem [shape: f32[1,128], index: 5, kind: input, shape index: {}]   ;;  %s1518_s6 = inlined_call_operand.hbm [shape: f32[8,16,128], index: 6, kind: output, shape index: {}]  }
   0x1   :  { %13 = vsyncpa [#allocation3 + $0x1], 0 }
   0x2   :  { %14 = vsyncpa [#allocation6], 0 }
   0x3   :  { %15 = vsyncpa [#allocation9], 0 }
   0x4   :  { %16 = vsyncpa [#allocation4], 0 }
   0x5   :  { %18 = vsyncpa [#allocation4 + $0x1], 0  ;;  %s1280_s21 = smov 0   ;;  %s1282_s22 = smov 0  }
   0x6   :  { %s1284_s23 = smov 0   ;;  %s1286_s24 = smov 0  }
   0x7 LB: > { %s1301_s25 = sadd.s32 4294967295, %s1234_s24   ;;  %s811_s26 = sadd.s32 4294967294, %s1234_s24   ;;  %s1234_s24 = sphi %s1286_s24, %s1544_s24   ;;  %s1230_s23 = sphi %s1284_s23, %s1543_s23   ;;  %s1226_s22 = sphi %s1282_s22, %s1542_s22   ;;  %s1222_s21 = sphi %s1280_s21, %s1541_s21  }
   0x8   : > { %p44_p0 = scmp.ne.s32.totalorder %s1226_s22, %s1222_s21  ;;  %p1519_p1 = scmp.eq.s32.totalorder %s1301_s25, 0 }
   0x9   : > { %p173_p2 = scmp.eq.s32.totalorder %s1301_s25, 7  ;;  %p179_p3 = scmp.eq.s32.totalorder %s811_s26, 7 }
   0xa   : > { %p1310_p4 = por %p1519_p1, %p44_p0  ;;  %p812_p5 = scmp.ge.s32.totalorder %s1234_s24, 1 }
   0xb   : > { %p1315_p6 = por %p179_p3, %p44_p0  ;;  %p186_p7 = scmp.lt.s32.totalorder %s1234_s24, 9 }
   0xc   : > { %s1525_s27 = scalar_select %p1310_p4, 1, 0 }
   0xd   : > { %s1526_s28 = scalar_select %p1315_p6, 1, 0 }
   0xe   : > { %p1320_p8 = pnand %p812_p5, %p186_p7  ;;  %s1236_s30 = smov [#allocation5]  }
   0xf   : > { %s198_s7 = sshll.u32 %s1236_s30, 4  ;;  %s1237_s9 = smov [#allocation7]   ;;  %s199_s7 = int_to_ptr.vmem [resolvable:$true] %s198_s7 }
  0x10   : > { %s1527_s29 = scalar_select %p1320_p8, 1, 0 }
  0x11   : > { %p983_p9 = pneg %p1320_p8  ;;  %s211_s10 = sshll.u32 %s1237_s9, 4  ;;  %s212_s10 = int_to_ptr.vmem [resolvable:$true] %s211_s10 }
  0x12   : > { %s1238_s11 = smov [#allocation8]   ;;  %s1067_s13 = scalar_lea.vmem %s199_s7, 256 }
  0x13   : > { %p1328_p10 = pnand %p983_p9, %p1519_p1  ;;  %s227_s12 = sshll.u32 %s1238_s11, 4  ;;  %s228_s12 = int_to_ptr.vmem [resolvable:$true] %s227_s12 }
  0x14   : > { %p1068_p12 = scmp.ne.s32.totalorder %s199_s7, %s1067_s13  ;;  %p1075_p3 = scmp.lt.s32.totalorder %s199_s7, %s199_s7 }
  0x15   : > { %p1058_p11 = pneg %p1328_p10  ;;  %p1076_p5 = scmp.lt.s32.totalorder %s1067_s13, %s1067_s13 }
  0x17   : > { %p1070_p13 = pnand %p1068_p12, %p1058_p11  ;;  %p1077_p7 = por %p1076_p5, %p1075_p3 }
  0x19   : > { %p1071_p0 = pneg %p1070_p13 }
  0x1b   : > { %p1078_p9 = pnand %p1077_p7, %p1071_p0 }
  0x1d   : > { %1081 = shalt.err (!%p1078_p9)
}
  0x1e   : > { %s1520_s14 = smov 128   ;;  %s1521_s15 = smov 8  }
  0x1f   : > { %986 = dma.hbm_to_vmem [thread:$0]  (!%p1328_p10), %s1513_s1, 256, %s199_s7, [#allocation6], %s1520_s14, %s1520_s14, %s1521_s15  }
  0x20   : > { %s1093_s18 = scalar_lea.vmem %s212_s10, 2048  ;;  %p1101_p0 = scmp.lt.s32.totalorder %s212_s10, %s212_s10 }
  0x21   : > { %p1094_p12 = scmp.ne.s32.totalorder %s212_s10, %s1093_s18  ;;  %p1102_p5 = scmp.lt.s32.totalorder %s1093_s18, %s1093_s18 }
  0x23   : > { %p1096_p13 = pnand %p1094_p12, %p1058_p11  ;;  %p1103_p7 = por %p1102_p5, %p1101_p0 }
  0x25   : > { %p1097_p3 = pneg %p1096_p13 }
  0x27   : > { %p1104_p9 = pnand %p1103_p7, %p1097_p3 }
  0x29   : > { %1107 = shalt.err (!%p1104_p9)
}
  0x2a   : > { %989 = dma.hbm_to_vmem [thread:$0]  (!%p1328_p10), %s1514_s2, 2048, %s212_s10, [#allocation6], %s1520_s14, %s1520_s14, %s1521_s15  }
  0x2b   : > { %s1119_s26 = scalar_lea.vmem %s228_s12, 2048  ;;  %p1127_p0 = scmp.lt.s32.totalorder %s228_s12, %s228_s12 }
  0x2c   : > { %p1120_p1 = scmp.ne.s32.totalorder %s228_s12, %s1119_s26  ;;  %p1128_p3 = scmp.lt.s32.totalorder %s1119_s26, %s1119_s26 }
  0x2e   : > { %p1122_p12 = pnand %p1120_p1, %p1058_p11  ;;  %p1129_p5 = por %p1128_p3, %p1127_p0 }
  0x30   : > { %p1123_p13 = pneg %p1122_p12 }
  0x32   : > { %p1130_p7 = pnand %p1129_p5, %p1123_p13 }
  0x34   : > { %1133 = shalt.err (!%p1130_p7)
}
  0x35   : > { %992 = dma.hbm_to_vmem [thread:$0]  (!%p1328_p10), %s1516_s4, 2048, %s228_s12, [#allocation9], %s1520_s14, %s1520_s14, %s1521_s15  }
  0x36   : > { %s1368_s9 = sadd.s32 1, %s1234_s24   ;;  %s31_s10 = sadd.s32 1, %s1230_s23 }
  0x37   : > { %s28_s8 = ssub.s32 %s1234_s24, %s1368_s9  ;;  %p38_p11 = scmp.ne.s32.totalorder %s1230_s23, %s1226_s22 }
  0x38   : > { %p29_p1 = scmp.eq.s32.totalorder %s28_s8, 0  ;;  %p39_p9 = scmp.eq.s32.totalorder %s1234_s24, 0 }
  0x39   : > { %p1004_p12 = scmp.lt.s32.totalorder %s1234_s24, 8  ;;  %p1382_p0 = por %p173_p2, %p38_p11 }
  0x3a   : > { %s1378_s11 = scalar_select %p29_p1, %s1230_s23, %s31_s10  }
  0x3b   : > { %p40_p13 = por %p39_p9, %p38_p11  ;;  %s244_s16 = sand.u32 1, %s1230_s23  }
  0x3c   : > { %s1529_s13 = scalar_select %p1382_p0, 1, 0 }
  0x3d   : > { %s837_s17 = sshll.u32 %s1234_s24, 8  ;;  %s817_s12 = sshll.u32 %s244_s16, 4 }
  0x3e   : > { %s1391_s20 = scalar_lea.hbm %s1512_s0, %s837_s17  ;;  %s248_s26 = scalar_lea.vmem [#allocation2], %s817_s12 }
  0x3f   : > { %s255_s30 = sshll.u32 %s248_s26, 4  ;;  %p1393_p10 = pnand %p1004_p12, %p40_p13  ;;  %s1397_s30 = int_to_ptr.vmem [resolvable:$true] %s255_s30 }
  0x40   : > { %s1399_s8 = scalar_lea.sflag [#allocation3], %s244_s16  ;;  %s1134_s10 = scalar_lea.hbm %s1391_s20, 256 }
  0x41   : > { %p1135_p2 = scmp.ne.s32.totalorder %s1391_s20, %s1134_s10  ;;  %p1136_p3 = pneg %p1393_p10 }
  0x42   : > { %s1139_s12 = scalar_lea.hbm %s1512_s0, 2048  ;;  %p1140_p1 = scmp.lt.s32.totalorder %s1391_s20, %s1512_s0 }
  0x43   : > { %p1137_p5 = pnand %p1136_p3, %p1135_p2  ;;  %p1141_p11 = scmp.lt.s32.totalorder %s1139_s12, %s1134_s10 }
  0x45   : > { %p1138_p7 = pneg %p1137_p5  ;;  %p1142_p9 = por %p1141_p11, %p1140_p1 }
  0x47   : > { %p1143_p12 = pnand %p1142_p9, %p1138_p7 }
  0x49   : > { %1146 = shalt.err (!%p1143_p12)
}
  0x4a   : > { %s1147_s16 = scalar_lea.vmem %s1397_s30, 256  ;;  %s1241_s14 = smov [#allocation2]  }
  0x4b   : > { %p1148_p13 = scmp.ne.s32.totalorder %s1397_s30, %s1147_s16  ;;  %s1152_s15 = sshll.u32 %s1241_s14, 4  ;;  %s1153_s15 = int_to_ptr.vmem [resolvable:$false] %s1152_s15 }
  0x4c   : > { %s1154_s17 = scalar_lea.vmem %s1153_s15, 512  ;;  %p1155_p5 = scmp.lt.s32.totalorder %s1397_s30, %s1153_s15 }
  0x4d   : > { %p1150_p6 = pnand %p1148_p13, %p1136_p3  ;;  %p1156_p0 = scmp.lt.s32.totalorder %s1154_s17, %s1147_s16 }
  0x4f   : > { %p1151_p2 = pneg %p1150_p6  ;;  %p1157_p4 = por %p1156_p0, %p1155_p5 }
  0x51   : > { %p1158_p8 = pnand %p1157_p4, %p1151_p2 }
  0x53   : > { %1161 = shalt.err (!%p1158_p8)
}
  0x54   : > { %s1531_s10 = smov 8   ;;  %s1532_s18 = smov 128  }
  0x55   : > { %996 = dma.hbm_to_vmem [thread:$0]  (!%p1393_p10), %s1391_s20, 256, %s1397_s30, %s1399_s8, %s1532_s18, %s1532_s18, %s1531_s10  }
  0x56   : > { %p1533_p6 = scmp.ne.s32.totalorder %s1527_s29, 0 }
  0x57   : > { %s1426_s14 = sand.u32 (!%p1533_p6), 1, %s1226_s22   ;;  %p1534_p4 = scmp.ne.s32.totalorder (!%p1533_p6), %s1525_s27, 0 }
  0x58   : > { %267 = sbr.rel (%p1533_p6) target bundleno = 1255 (0x4e7), region = 44  ;;  %s821_s15 = sshll.u32 (!%p1533_p6), %s1426_s14, 4 }
  0x59   : > { %s270_s12 = scalar_lea.sflag (!%p1533_p6), [#allocation3], %s1426_s14  ;;  %s1432_s7 = scalar_lea.vmem (!%p1533_p6), [#allocation2], %s821_s15 }
  0x5d   : > { %1205 = dma.done.wait (%p1534_p4), %s270_s12, 256  }
  0x5e   : > { %1207 = vsyncadd (%p1534_p4), %s270_s12, 4294967040  ;;  %p1535_p8 = scmp.eq.s32.totalorder %s1301_s25, 0 }
  0x60   : > { %1209 = dma.done.wait (%p1535_p8), [#allocation6], 2304   ;;  %p1536_p0 = pmov %p1535_p8 }
  0x62   : > { %1211 = vsyncadd (%p1536_p0), [#allocation6], 4294964992  ;;  %p1537_p10 = pmov %p1536_p0 }
  0x63   : > { %p1538_p3 = pmov %p1536_p0 }
  0x64   : > { %1213 = dma.done.wait (%p1537_p10), [#allocation9], 2048  }
  0x65   : > { %1215 = vsyncadd (%p1538_p3), [#allocation9], 4294965248  ;;  %v333_v0 = vld [vmem:[#allocation7 + $0x78] sm:$0xff]  ;;  %v332_v1 = vld [vmem:[#allocation7 + $0x70] sm:$0xff]  ;;  %vm416_vm0 = vcmask 130048   ;;  %s313_s8 = scalar_lea.vmem [#allocation10], %s821_s15 }
  0x66   : > { %883 = vmatprep.subr.mxu0 %v333_v0  ;;  %v331_v2 = vld [vmem:[#allocation7 + $0x68] sm:$0xff]  ;;  %v330_v3 = vld [vmem:[#allocation7 + $0x60] sm:$0xff]  ;;  %v329_v5 = vld [vmem:[#allocation7 + $0x58] sm:$0xff]  ;;  %s709_s19 = sshll.u32 %s313_s8, 4  ;;  %s838_s26 = sshll.u32 %s1301_s25, 8  ;;  %s1465_s19 = int_to_ptr.vmem [resolvable:$true] %s709_s19 }
  0x67   : > { %884 = vmatpush3.msra.mxu0 %v333_v0  ;;  %v314_v4 = vld [vmem:[%s1432_s7] sm:$0xff]  ;;  %v327_v7 = vld [vmem:[#allocation7 + $0x48] sm:$0xff]  ;;  %v325_v9 = vld [vmem:[#allocation7 + $0x38] sm:$0xff]  ;;  %s1470_s10 = scalar_lea.hbm %s1518_s6, %s838_s26  ;;  %s696_s18 = scalar_lea.sflag [#allocation4], %s1426_s14 }
  0x68   : > { %885 = vmatprep.subr.mxu0 %v332_v1  ;;  %915 = vmatprep.mubr.f32.mxu0 %v314_v4  ;;  %v328_v6 = vld [vmem:[#allocation7 + $0x50] sm:$0xff]  ;;  %v326_v8 = vld [vmem:[#allocation7 + $0x40] sm:$0xff]  ;;  %v323_v11 = vld [vmem:[#allocation7 + $0x28] sm:$0xff]  ;;  %s1162_s15 = scalar_lea.vmem %s1465_s19, 256  ;;  %p1539_p1 = scmp.ne.s32.totalorder %s1529_s13, 0 }
  0x69   : > { %886 = vmatpush3.msra.mxu0 %v332_v1  ;;  %v324_v10 = vld [vmem:[#allocation7 + $0x30] sm:$0xff]  ;;  %v322_v12 = vld [vmem:[#allocation7 + $0x20] sm:$0xff]  ;;  %v321_v13 = vld [vmem:[#allocation7 + $0x18] sm:$0xff]  ;;  %p1163_p7 = scmp.ne.s32.totalorder %s1465_s19, %s1162_s15  ;;  %s1242_s25 = smov [#allocation10]  }
  0x6a   : > { %887 = vmatprep.subr.mxu0 %v331_v2  ;;  %v320_v14 = vld [vmem:[#allocation7 + $0x10] sm:$0xff]  ;;  %v319_v15 = vld [vmem:[#allocation7 + $0x8] sm:$0xff]  ;;  %v318_v16 = vld [vmem:[#allocation7] sm:$0xff]  ;;  %s1166_s12 = sshll.u32 %s1242_s25, 4  ;;  %s1167_s12 = int_to_ptr.vmem [resolvable:$false] %s1166_s12 }
  0x6b   : > { %888 = vmatpush3.msra.mxu0 %v331_v2  ;;  %v315_v17 = vld [vmem:[%s1432_s7 + $0x8] sm:$0xff]  ;;  %v316_v18 = vld [vmem:[#allocation5] sm:$0xff]  ;;  %v512_v25 = vld [vmem:[#allocation8 + $0x60] sm:$0xff]  ;;  %p1164_p11 = pnand %p1163_p7, %p1539_p1  ;;  %s1168_s7 = scalar_lea.vmem %s1167_s12, 512 }
  0x6c   : > { %889 = vmatprep.subr.mxu0 %v330_v3  ;;  %922 = vmatprep.mubr.msk.f32.mxu1 %vm416_vm0, %v316_v18  ;;  %v1450_v21 = vld [vmem:[#allocation5 + $0x8] sm:$0xff]  ;;  %v514_v23 = vld [vmem:[#allocation8 + $0x70] sm:$0xff]  ;;  %v513_v24 = vld [vmem:[#allocation8 + $0x68] sm:$0xff]  ;;  %p1169_p12 = scmp.lt.s32.totalorder %s1465_s19, %s1167_s12  ;;  %p1170_p13 = scmp.lt.s32.totalorder %s1168_s7, %s1162_s15 }
  0x6d   : > { %890 = vmatpush3.msra.mxu0 %v330_v3  ;;  %v515_v22 = vld [vmem:[#allocation8 + $0x78] sm:$0xff]  ;;  %v510_v27 = vld [vmem:[#allocation8 + $0x50] sm:$0xff]  ;;  %v509_v28 = vld [vmem:[#allocation8 + $0x48] sm:$0xff]  ;;  %p1165_p9 = pneg %p1164_p11 }
  0x6e   : > { %891 = vmatprep.subr.mxu0 %v329_v5  ;;  %v511_v26 = vld [vmem:[#allocation8 + $0x58] sm:$0xff]  ;;  %v508_v29 = vld [vmem:[#allocation8 + $0x40] sm:$0xff]  ;;  %v506_v31 = vld [vmem:[#allocation8 + $0x30] sm:$0xff]  ;;  %p1171_p2 = por %p1170_p13, %p1169_p12 }
  0x6f   : > { %892 = vmatpush3.msra.mxu0 %v329_v5  ;;  %v507_v30 = vld [vmem:[#allocation8 + $0x38] sm:$0xff]  ;;  %v505_v32 = vld [vmem:[#allocation8 + $0x28] sm:$0xff]  ;;  %v504_v33 = vld [vmem:[#allocation8 + $0x20] sm:$0xff] }
  0x70   : > { %893 = vmatprep.subr.mxu0 %v328_v6  ;;  %v503_v34 = vld [vmem:[#allocation8 + $0x18] sm:$0xff]  ;;  %v502_v35 = vld [vmem:[#allocation8 + $0x10] sm:$0xff]  ;;  %v501_v36 = vld [vmem:[#allocation8 + $0x8] sm:$0xff]  ;;  %p1172_p5 = pnand %p1171_p2, %p1165_p9 }
  0x71   : > { %894 = vmatpush3.msra.mxu0 %v328_v6  ;;  %v500_v37 = vld [vmem:[#allocation8] sm:$0xff]  ;;  %v826_v38 = vld [vmem:[%s1515_s3] ss:$0 sm:$0xff] }
  0x72   : > { %895 = vmatprep.subr.mxu0 %v327_v7  ;;  %v829_v48 = vld [vmem:[%s1517_s5] ss:$0 sm:$0xff] }
  0x73   : > { %896 = vmatpush3.msra.mxu0 %v327_v7 }
  0x74   : > { %897 = vmatprep.subr.mxu0 %v326_v8 }
  0x75   : > { %898 = vmatpush3.msra.mxu0 %v326_v8 }
  0x76   : > { %899 = vmatprep.subr.mxu0 %v325_v9 }
  0x77   : > { %900 = vmatpush3.msra.mxu0 %v325_v9 }
  0x78   : > { %901 = vmatprep.subr.mxu0 %v324_v10 }
  0x79   : > { %902 = vmatpush3.msra.mxu0 %v324_v10 }
  0x7a   : > { %903 = vmatprep.subr.mxu0 %v323_v11 }
  0x7b   : > { %904 = vmatpush3.msra.mxu0 %v323_v11 }
  0x7c   : > { %905 = vmatprep.subr.mxu0 %v322_v12 }
  0x7d   : > { %906 = vmatpush3.msra.mxu0 %v322_v12 }
  0x7e   : > { %907 = vmatprep.subr.mxu0 %v321_v13 }
  0x7f   : > { %908 = vmatpush3.msra.mxu0 %v321_v13 }
  0x80   : > { %909 = vmatprep.subr.mxu0 %v320_v14 }
  0x81   : > { %910 = vmatpush3.msra.mxu0 %v320_v14 }
  0x82   : > { %911 = vmatprep.subr.mxu0 %v319_v15 }
  0x83   : > { %912 = vmatpush3.msra.mxu0 %v319_v15 }
  0x84   : > { %913 = vmatprep.subr.mxu0 %v318_v16 }
  0x85   : > { %914 = vmatpush3.msra.mxu0 %v318_v16 }
  0x86   : > { %916 = vmatmul.mubr.f32.vlgmr.msra.gmra.mxu0 %v315_v17 }
  0x87   : > { %964 = vmatprep.mubr.msk.f32.mxu0 %vm416_vm0, %v316_v18 }
 0x146   : > { %v917_v19 = vpop.f32.mrf.mxu0 }
 0x147   : > { %918 = vmatprep.subr.mxu1 %v917_v19 }
 0x148   : > { %v400_v20 = vpop.f32.mrf.mxu0  ;;  %919 = vmatpush3.msra.mxu1 %v917_v19 }
 0x149   : > { %920 = vmatprep.subr.mxu1 %v400_v20 }
 0x14a   : > { %921 = vmatpush3.msra.mxu1 %v400_v20 }
 0x14b   : > { %923 = vmatmul.mubr.msk.f32.vlgmr.msra.gmra.mxu1 %vm416_vm0, %v1450_v21  ;;  %925 = vmatprep.subr.mxu1 %v515_v22 }
 0x14c   : > { %926 = vmatpush3.msra.mxu1 %v515_v22 }
 0x14d   : > { %927 = vmatprep.subr.mxu1 %v514_v23 }
 0x14e   : > { %928 = vmatpush3.msra.mxu1 %v514_v23 }
 0x14f   : > { %929 = vmatprep.subr.mxu1 %v513_v24 }
 0x150   : > { %930 = vmatpush3.msra.mxu1 %v513_v24 }
 0x151   : > { %931 = vmatprep.subr.mxu1 %v512_v25 }
 0x152   : > { %932 = vmatpush3.msra.mxu1 %v512_v25 }
 0x153   : > { %933 = vmatprep.subr.mxu1 %v511_v26 }
 0x154   : > { %934 = vmatpush3.msra.mxu1 %v511_v26 }
 0x155   : > { %935 = vmatprep.subr.mxu1 %v510_v27 }
 0x156   : > { %936 = vmatpush3.msra.mxu1 %v510_v27 }
 0x157   : > { %937 = vmatprep.subr.mxu1 %v509_v28 }
 0x158   : > { %938 = vmatpush3.msra.mxu1 %v509_v28 }
 0x159   : > { %939 = vmatprep.subr.mxu1 %v508_v29 }
 0x15a   : > { %940 = vmatpush3.msra.mxu1 %v508_v29 }
 0x15b   : > { %941 = vmatprep.subr.mxu1 %v507_v30 }
 0x15c   : > { %942 = vmatpush3.msra.mxu1 %v507_v30 }
 0x15d   : > { %943 = vmatprep.subr.mxu1 %v506_v31 }
 0x15e   : > { %944 = vmatpush3.msra.mxu1 %v506_v31 }
 0x15f   : > { %945 = vmatprep.subr.mxu1 %v505_v32 }
 0x160   : > { %946 = vmatpush3.msra.mxu1 %v505_v32 }
 0x161   : > { %947 = vmatprep.subr.mxu1 %v504_v33 }
 0x162   : > { %948 = vmatpush3.msra.mxu1 %v504_v33 }
 0x163   : > { %949 = vmatprep.subr.mxu1 %v503_v34 }
 0x164   : > { %950 = vmatpush3.msra.mxu1 %v503_v34 }
 0x165   : > { %951 = vmatprep.subr.mxu1 %v502_v35 }
 0x166   : > { %952 = vmatpush3.msra.mxu1 %v502_v35 }
 0x167   : > { %953 = vmatprep.subr.mxu1 %v501_v36 }
 0x168   : > { %954 = vmatpush3.msra.mxu1 %v501_v36 }
 0x169   : > { %955 = vmatprep.subr.mxu1 %v500_v37 }
 0x16a   : > { %956 = vmatpush3.msra.mxu1 %v500_v37 }
 0x20b   : > { %v924_v39 = vpop.f32.mrf.mxu1 }
 0x20c   : > { %v495_v40 = vadd.f32 %v924_v39, %v826_v38 }
 0x20d   : > { %v489_v41 = vpop.f32.mrf.mxu1 }
 0x20e   : > { %v490_v42 = vadd.f32 %v826_v38, %v489_v41  ;;  %v499_v44 = vmax.f32 %v495_v40, 0.0 }
 0x210   : > { %v498_v43 = vmax.f32 %v490_v42, 0.0 }
 0x212   : > { %957 = vmatprep.mubr.f32.mxu1 %v498_v43 }
 0x213   : > { %958 = vmatmul.mubr.f32.vlgmr.msra.gmra.mxu1 %v499_v44 }
 0x2d3   : > { %v959_v45 = vpop.f32.mrf.mxu1 }
 0x2d4   : > { %960 = vmatprep.subr.mxu0 %v959_v45 }
 0x2d5   : > { %v582_v46 = vpop.f32.mrf.mxu1  ;;  %961 = vmatpush3.msra.mxu0 %v959_v45 }
 0x2d6   : > { %962 = vmatprep.subr.mxu0 %v582_v46 }
 0x2d7   : > { %963 = vmatpush3.msra.mxu0 %v582_v46 }
 0x2d8   : > { %965 = vmatmul.mubr.msk.f32.vlgmr.msra.gmra.mxu0 %vm416_vm0, %v1450_v21 }
 0x398   : > { %v966_v47 = vpop.f32.mrf.mxu0 }
 0x399   : > { %v670_v51 = vadd.f32 %v966_v47, %v829_v48 }
 0x39a   : > { %v664_v49 = vpop.f32.mrf.mxu0 }
 0x39b   : > { %v665_v50 = vadd.f32 %v829_v48, %v664_v49 }
 0x39d   : > { %673 = vmax.xlane.f32.xlu0 %v665_v50 }
 0x3a1   : > { %675 = vmax.xlane.f32.xlu0 %v670_v51 }
 0x426   : > { %v674_v52 = vpop.xlane.xlu0 %673 }
 0x427   : > { %v677_v53 = vsub.f32 %v665_v50, %v674_v52 }
 0x429   : > { %v679_v54 = vmul.f32 1.442695, %v677_v53 }
 0x42a   : > { %v676_v55 = vpop.xlane.xlu0 %675 }
 0x42b   : > { %v678_v56 = vsub.f32 %v670_v51, %v676_v55  ;;  %1048 = vpow2.f32 %v679_v54 }
 0x42d   : > { %v681_v57 = vmul.f32 1.442695, %v678_v56 }
 0x42f   : > { %1050 = vpow2.f32 %v681_v57 }
 0x438   : > { %v1049_v58 = vpop.eup %1048 }
 0x439   : > { %683 = vadd.xlane.f32.xlu1 %v1049_v58 }
 0x43c   : > { %v1051_v59 = vpop.eup %1050 }
 0x43d   : > { %685 = vadd.xlane.f32.xlu1 %v1051_v59 }
 0x4c2   : > { %v684_v60 = vpop.xlane.xlu1 %683 }
 0x4c3   : > { %1052 = vlog2.f32 %v684_v60 }
 0x4c6   : > { %v686_v61 = vpop.xlane.xlu1 %685 }
 0x4c7   : > { %1054 = vlog2.f32 %v686_v61 }
 0x4d0   : > { %v1053_v62 = vpop.eup %1052 }
 0x4d1   : > { %v688_v63 = vmul.f32 0.6931472, %v1053_v62 }
 0x4d3   : > { %v691_v0 = vsub.f32 %v677_v53, %v688_v63 }
 0x4d4   : > { %v1055_v1 = vpop.eup %1054 }
 0x4d5   : > { %693 = vst [vmem:[%s313_s8] sm:$0xff] %v691_v0  ;;  %v690_v2 = vmul.f32 0.6931472, %v1055_v1 }
 0x4d7   : > { %v692_v3 = vsub.f32 %v678_v56, %v690_v2 }
 0x4d9   : > { %694 = vst [vmem:[%s313_s8 + $0x8] sm:$0xff] %v692_v3 }
 0x4da   : > { %1175 = shalt.err (!%p1172_p5)
}
 0x4db   : > { %s1176_s27 = scalar_lea.hbm %s1470_s10, 256  ;;  %s1180_s30 = scalar_lea.hbm %s1518_s6, 2048 }
 0x4dc   : > { %p1177_p6 = scmp.ne.s32.totalorder %s1470_s10, %s1176_s27  ;;  %p1181_p0 = scmp.lt.s32.totalorder %s1470_s10, %s1518_s6 }
 0x4dd   : > { %p1182_p10 = scmp.lt.s32.totalorder %s1180_s30, %s1176_s27 }
 0x4de   : > { %p1178_p4 = pnand %p1177_p6, %p1539_p1 }
 0x4df   : > { %p1183_p3 = por %p1182_p10, %p1181_p0 }
 0x4e0   : > { %p1179_p8 = pneg %p1178_p4 }
 0x4e2   : > { %p1184_p7 = pnand %p1183_p3, %p1179_p8 }
 0x4e4   : > { %1187 = shalt.err (!%p1184_p7)
}
 0x4e5   : > { %s1243_s16 = smov 128   ;;  %s1244_s17 = smov 8  }
 0x4e6   : > { %981 = dma.vmem_to_hbm [thread:$0]  (%p1539_p1), %s1465_s19, 256, %s1470_s10, %s696_s18, %s1243_s16, %s1243_s16, %s1244_s17  }
 0x4e7 PF: > { %p1008_p11 = scmp.ge.s32.totalorder %s1234_s24, 2  ;;  %s724_s15 = sand.u32 1, %s1222_s21  }
 0x4e8   : > { %p1540_p9 = scmp.ne.s32.totalorder %s1526_s28, 0  ;;  %s725_s25 = scalar_lea.sflag [#allocation4], %s724_s15 }
 0x4ea   : > { %p998_p12 = pnand %p1008_p11, %p1540_p9 }
 0x4ec   : > { %p999_p13 = pneg %p998_p12 }
 0x4ee   : > { %1217 = dma.done.wait (%p999_p13), %s725_s25, 256  }
 0x4ef   : > { %1219 = vsyncadd (%p999_p13), %s725_s25, 4294967040  ;;  %p21_p2 = scmp.ge.s32.totalorder %s1368_s9, 10   ;;  %s1541_s21 = smov %s1226_s22 }
 0x4f0   : > { %s1542_s22 = smov %s1230_s23  ;;  %s1543_s23 = smov %s1378_s11 }
 0x4f1   : > { %s1544_s24 = smov %s1368_s9  ;;  %23 = sbr.rel (!%p21_p2) target bundleno = 7 (0x7), region = 101 }
 0x4f6   :  { %730 = vsyncpa [#allocation3], 1 }
 0x4f7   :  { %732 = vsyncpa [#allocation3 + $0x1], 1 }
 0x4f8   :  { %733 = vsyncpa [#allocation6], 1 }
 0x4f9   :  { %734 = vsyncpa [#allocation9], 1 }
 0x4fa   :  { %735 = vsyncpa [#allocation4], 1 }
 0x4fb   :  { %737 = vsyncpa [#allocation4 + $0x1], 1 }

</bundles_post_ra>
